<compile_context>
chip_gen: v6e
topology: v6e:2x2x1
jax: 0.10.0
libtpu: 0.0.40
codegen_flags: <defaults>
</compile_context>

<pallas_src>
import jax
import jax.numpy as jnp
from jax.experimental import pallas as pl
from jax.experimental.pallas import tpu as pltpu


def _round_up(n, m):
    return ((n + m - 1) // m) * m


def _mlp_kernel(x_ref, w1_ref, b1_ref, w2_ref, b2_ref, w3_ref, b3_ref, o_ref):
    """One batch tile of the fused MLP.

    x_ref  : (TB, 400) f32    batch tile (pipelined over the grid)
    w1_ref : (400, 32) bf16   resident across grid steps (constant index_map)
    b1_ref : (1, 32)   f32
    w2_ref : (32, 32)  bf16
    b2_ref : (1, 32)   f32
    w3_ref : (32, 1)   f32    folded column: w3[:,0] - w3[:,1]
    b3_ref : (1, 1)    f32    folded bias:   b3[0]   - b3[1]
    o_ref  : (TB, 1)   f32    p(class0); class1 = 1 - p(class0) in the wrapper
    """
    # Linear(400, 32) + ReLU. Cast x -> bf16 in-kernel (VPU, hidden under DMA);
    # MXU bf16 x bf16 with f32 accumulation.
    xb = x_ref[...].astype(jnp.bfloat16)
    h1 = jnp.dot(xb, w1_ref[...], preferred_element_type=jnp.float32)
    h1 = jnp.maximum(h1 + b1_ref[...], 0.0)

    # Linear(32, 32) + ReLU (bf16 operands, f32 accumulation).
    h2 = jnp.dot(h1.astype(jnp.bfloat16), w2_ref[...],
                 preferred_element_type=jnp.float32)
    h2 = jnp.maximum(h2 + b2_ref[...], 0.0)

    # Two-class softmax == sigmoid of the logit difference:
    #   softmax([l0, l1])[0] = 1 / (1 + exp(l1 - l0)) = sigmoid(l0 - l1)
    # Tiny final dot stays f32; exact reciprocal keeps p0 in [0, 1].
    z = jnp.dot(h2, w3_ref[...], preferred_element_type=jnp.float32) + b3_ref[...]
    o_ref[...] = pl.reciprocal(1.0 + jnp.exp(-z), approx=False)


def seq_32_32_forward(x_nchw, params, *, tb_max=2048):
    """x_nchw: (B, 20, 1, 20) float32. Returns (B, 2) softmax probabilities."""
    B = x_nchw.shape[0]
    w1, b1, w2, b2, w3, b3 = params

    # Fold the final 2-class linear + softmax into a single logit-difference
    # column (host side, once, tiny).
    w3d = (w3[:, 0:1] - w3[:, 1:2]).astype(jnp.float32)        # (32, 1)
    b3d = (b3[:, 0:1] - b3[:, 1:2]).astype(jnp.float32)        # (1, 1)

    # Flatten only (free layout op) — x stays f32; the kernel casts it.
    x2d = x_nchw.reshape(B, -1)                                # (B, 400) f32
    w1b = w1.astype(jnp.bfloat16)                              # (400, 32)
    w2b = w2.astype(jnp.bfloat16)                              # (32, 32)

    # Batch tile: multiple of 8 (f32 sublane). No host-side padding: the grid
    # is cdiv(B, TB) and Pallas masks the ragged last block's output writes.
    TB = min(tb_max, _round_up(B, 8))
    grid = (pl.cdiv(B, TB),)

    weight_bytes = (400 * 32 * 2 + 32 * 4 + 32 * 32 * 2 + 32 * 4 + 32 * 4 + 4)
    cost = pl.CostEstimate(
        flops=2 * B * (400 * 32 + 32 * 32 + 32 * 1),
        transcendentals=2 * B,
        bytes_accessed=B * 400 * 4 + weight_bytes + B * 1 * 4,
    )

    p0 = pl.pallas_call(
        _mlp_kernel,
        out_shape=jax.ShapeDtypeStruct((B, 1), jnp.float32),
        grid=grid,
        in_specs=[
            pl.BlockSpec((TB, 400), lambda i: (i, 0)),    # x: tiled over batch
            pl.BlockSpec((400, 32), lambda i: (0, 0)),    # w1: VMEM-resident
            pl.BlockSpec((1, 32), lambda i: (0, 0)),      # b1
            pl.BlockSpec((32, 32), lambda i: (0, 0)),     # w2
            pl.BlockSpec((1, 32), lambda i: (0, 0)),      # b2
            pl.BlockSpec((32, 1), lambda i: (0, 0)),      # w3 (folded)
            pl.BlockSpec((1, 1), lambda i: (0, 0)),       # b3 (folded)
        ],
        out_specs=pl.BlockSpec((TB, 1), lambda i: (i, 0)),
        compiler_params=pltpu.CompilerParams(
            dimension_semantics=("parallel",),
            vmem_limit_bytes=32 * 1024 * 1024,            # safe on v5e/v6e/v7x
        ),
        cost_estimate=cost,
    )(x2d, w1b, b1, w2b, b2, w3d, b3d)

    # Rebuild both softmax columns on tiny data in the wrapper.
    return jnp.concatenate([p0, 1.0 - p0], axis=-1)


def init_params(key):
    """Deterministic synthetic parameters matching nn.Linear shapes.

    PyTorch Linear stores weight as (out, in); we store the transpose (in, out)
    so the kernel computes x @ W + b directly.
    """
    k1, k2, k3, k4, k5, k6 = jax.random.split(key, 6)

    def uniform(k, shape, fan_in):
        bound = 1.0 / jnp.sqrt(fan_in)
        return jax.random.uniform(k, shape, jnp.float32, -bound, bound)

    w1 = uniform(k1, (400, 32), 400.0)
    b1 = uniform(k2, (1, 32), 400.0)
    w2 = uniform(k3, (32, 32), 32.0)
    b2 = uniform(k4, (1, 32), 32.0)
    w3 = uniform(k5, (32, 2), 32.0)
    b3 = uniform(k6, (1, 2), 32.0)
    return (w1, b1, w2, b2, w3, b3)


def _bf16_round(a):
    return a.astype(jnp.bfloat16).astype(jnp.float32)


def _reference(x_nchw, params, match_kernel_dtype=True):
    """Pure-JAX reference. If match_kernel_dtype, mimic the kernel's bf16
    rounding of the MXU operands so the comparison tolerance can stay tight."""
    w1, b1, w2, b2, w3, b3 = params
    x = x_nchw.reshape(x_nchw.shape[0], -1)
    rnd = _bf16_round if match_kernel_dtype else (lambda a: a)
    h1 = jnp.maximum(rnd(x) @ rnd(w1) + b1, 0.0)
    h2 = jnp.maximum(rnd(h1) @ rnd(w2) + b2, 0.0)
    logits = h2 @ w3 + b3
    return jax.nn.softmax(logits, axis=-1)


if __name__ == "__main__":
    key = jax.random.PRNGKey(0)
    k_x, k_p, k_x2 = jax.random.split(key, 3)

    # Forward implies flattened size 20*1*20 = 400 -> input NCHW (B, 20, 1, 20)
    params = init_params(k_p)

    # Small batch (single grid point, ragged vs. the 8-row tile).
    B = 4
    x = jax.random.normal(k_x, (B, 20, 1, 20), dtype=jnp.float32)
    out = jax.block_until_ready(seq_32_32_forward(x, params))
    ref = _reference(x, params)
    assert out.shape == (B, 2)
    assert jnp.allclose(out, ref, atol=5e-3, rtol=5e-3)
    assert jnp.allclose(jnp.sum(out, axis=-1), 1.0, atol=1e-5)

    # Non-multiple-of-8 batch, single block (no host-side pad anymore).
    B2 = 37
    x2 = jax.random.normal(k_x2, (B2, 20, 1, 20), dtype=jnp.float32)
    out2 = jax.block_until_ready(seq_32_32_forward(x2, params))
    ref2 = _reference(x2, params)
    assert out2.shape == (B2, 2)
    assert jnp.allclose(out2, ref2, atol=5e-3, rtol=5e-3)
    assert jnp.allclose(jnp.sum(out2, axis=-1), 1.0, atol=1e-5)

    # Multi-block grid with a ragged last block (exercises masked tail writes).
    out3 = jax.block_until_ready(seq_32_32_forward(x2, params, tb_max=16))
    assert out3.shape == (B2, 2)
    assert jnp.allclose(out3, ref2, atol=5e-3, rtol=5e-3)
    assert jnp.allclose(jnp.sum(out3, axis=-1), 1.0, atol=1e-5)

    print("KERNEL_OK")
</pallas_src>

<mosaic_0001>
module attributes {stable_mosaic.version = 11 : i64} {
  func.func @_mlp_kernel(%arg0: i32, %arg1: memref<8x400xf32, #tpu.memory_space<vmem>>, %arg2: memref<400x32xbf16, #tpu.memory_space<vmem>>, %arg3: memref<1x32xf32, #tpu.memory_space<vmem>>, %arg4: memref<32x32xbf16, #tpu.memory_space<vmem>>, %arg5: memref<1x32xf32, #tpu.memory_space<vmem>>, %arg6: memref<32x1xf32, #tpu.memory_space<vmem>>, %arg7: memref<1x1xf32, #tpu.memory_space<vmem>>, %arg8: memref<8x1xf32, #tpu.memory_space<vmem>>) attributes {dimension_semantics = [#tpu.dimension_semantics<parallel>], iteration_bounds = array<i64: 1>, scalar_prefetch = 0 : i64, scratch_operands = 0 : i64, tpu.core_type = #tpu.core_type<tc>, window_params = [{transform_indices = @transform_0, window_bounds = array<i64: 8, 400>}, {pipeline_mode = #tpu.pipeline_mode<synchronous>, transform_indices = @transform_1, window_bounds = array<i64: 400, 32>}, {pipeline_mode = #tpu.pipeline_mode<synchronous>, transform_indices = @transform_2, window_bounds = array<i64: 1, 32>}, {pipeline_mode = #tpu.pipeline_mode<synchronous>, transform_indices = @transform_3, window_bounds = array<i64: 32, 32>}, {pipeline_mode = #tpu.pipeline_mode<synchronous>, transform_indices = @transform_4, window_bounds = array<i64: 1, 32>}, {pipeline_mode = #tpu.pipeline_mode<synchronous>, transform_indices = @transform_5, window_bounds = array<i64: 32, 1>}, {pipeline_mode = #tpu.pipeline_mode<synchronous>, transform_indices = @transform_6, window_bounds = array<i64: 1, 1>}, {transform_indices = @transform_7, window_bounds = array<i64: 8, 1>}]} {
    %c0 = arith.constant 0 : index
    %c0_0 = arith.constant 0 : index
    %0 = vector.load %arg1[%c0, %c0_0] : memref<8x400xf32, #tpu.memory_space<vmem>>, vector<8x400xf32>
    %1 = arith.truncf %0 : vector<8x400xf32> to vector<8x400xbf16>
    %c0_1 = arith.constant 0 : index
    %c0_2 = arith.constant 0 : index
    %2 = vector.load %arg2[%c0_1, %c0_2] : memref<400x32xbf16, #tpu.memory_space<vmem>>, vector<400x32xbf16>
    %cst = arith.constant dense<0.000000e+00> : vector<8x32xf32>
    %3 = tpu.matmul %1, %2, %cst {dimension_numbers = #tpu.dot_dimension_numbers<[1], [0], [0], [1], [0, 0, 1, 1], [], []>} : vector<8x400xbf16>, vector<400x32xbf16>, vector<8x32xf32> -> vector<8x32xf32>
    %c0_3 = arith.constant 0 : index
    %c0_4 = arith.constant 0 : index
    %4 = vector.load %arg3[%c0_3, %c0_4] : memref<1x32xf32, #tpu.memory_space<vmem>>, vector<1x32xf32>
    %5 = vector.broadcast %4 : vector<1x32xf32> to vector<8x32xf32>
    %6 = arith.addf %3, %5 : vector<8x32xf32>
    %cst_5 = arith.constant 0.000000e+00 : f32
    %7 = vector.broadcast %cst_5 : f32 to vector<8x32xf32>
    %8 = arith.maximumf %6, %7 : vector<8x32xf32>
    %9 = arith.truncf %8 : vector<8x32xf32> to vector<8x32xbf16>
    %c0_6 = arith.constant 0 : index
    %c0_7 = arith.constant 0 : index
    %10 = vector.load %arg4[%c0_6, %c0_7] : memref<32x32xbf16, #tpu.memory_space<vmem>>, vector<32x32xbf16>
    %cst_8 = arith.constant dense<0.000000e+00> : vector<8x32xf32>
    %11 = tpu.matmul %9, %10, %cst_8 {dimension_numbers = #tpu.dot_dimension_numbers<[1], [0], [0], [1], [0, 0, 1, 1], [], []>} : vector<8x32xbf16>, vector<32x32xbf16>, vector<8x32xf32> -> vector<8x32xf32>
    %c0_9 = arith.constant 0 : index
    %c0_10 = arith.constant 0 : index
    %12 = vector.load %arg5[%c0_9, %c0_10] : memref<1x32xf32, #tpu.memory_space<vmem>>, vector<1x32xf32>
    %13 = vector.broadcast %12 : vector<1x32xf32> to vector<8x32xf32>
    %14 = arith.addf %11, %13 : vector<8x32xf32>
    %cst_11 = arith.constant 0.000000e+00 : f32
    %15 = vector.broadcast %cst_11 : f32 to vector<8x32xf32>
    %16 = arith.maximumf %14, %15 : vector<8x32xf32>
    %c0_12 = arith.constant 0 : index
    %c0_13 = arith.constant 0 : index
    %17 = vector.load %arg6[%c0_12, %c0_13] : memref<32x1xf32, #tpu.memory_space<vmem>>, vector<32x1xf32>
    %cst_14 = arith.constant dense<0.000000e+00> : vector<8x1xf32>
    %18 = tpu.matmul %16, %17, %cst_14 {dimension_numbers = #tpu.dot_dimension_numbers<[1], [0], [0], [1], [0, 0, 1, 1], [], []>} : vector<8x32xf32>, vector<32x1xf32>, vector<8x1xf32> -> vector<8x1xf32>
    %c0_15 = arith.constant 0 : index
    %c0_16 = arith.constant 0 : index
    %19 = vector.load %arg7[%c0_15, %c0_16] : memref<1x1xf32, #tpu.memory_space<vmem>>, vector<1x1xf32>
    %20 = vector.broadcast %19 : vector<1x1xf32> to vector<8x1xf32>
    %21 = arith.addf %18, %20 : vector<8x1xf32>
    %cst_17 = arith.constant 0.000000e+00 : f32
    %22 = vector.broadcast %cst_17 : f32 to vector<8x1xf32>
    %23 = arith.subf %22, %21 : vector<8x1xf32>
    %24 = math.exp %23 : vector<8x1xf32>
    %cst_18 = arith.constant 1.000000e+00 : f32
    %25 = vector.broadcast %cst_18 : f32 to vector<8x1xf32>
    %26 = arith.addf %25, %24 : vector<8x1xf32>
    %27 = tpu.reciprocal %26 : vector<8x1xf32> -> vector<8x1xf32>
    %c0_19 = arith.constant 0 : index
    %c0_20 = arith.constant 0 : index
    %28 = vector.load %arg8[%c0_19, %c0_20] : memref<8x1xf32, #tpu.memory_space<vmem>>, vector<8x1xf32>
    tpu.vector_store %arg8[%c0_19, %c0_20], %27 {strides = array<i32>} : memref<8x1xf32, #tpu.memory_space<vmem>>, vector<8x1xf32>,
    return
  }
  func.func @transform_0(%arg0: i32) -> (i32, i32) {
    %c0_i32 = arith.constant 0 : i32
    %c0_i32_0 = arith.constant 0 : i32
    return %arg0, %c0_i32 : i32, i32
  }
  func.func @transform_1(%arg0: i32) -> (i32, i32) {
    %c0_i32 = arith.constant 0 : i32
    %c0_i32_0 = arith.constant 0 : i32
    %c0_i32_1 = arith.constant 0 : i32
    return %c0_i32, %c0_i32_0 : i32, i32
  }
  func.func @transform_2(%arg0: i32) -> (i32, i32) {
    %c0_i32 = arith.constant 0 : i32
    %c0_i32_0 = arith.constant 0 : i32
    %c0_i32_1 = arith.constant 0 : i32
    return %c0_i32, %c0_i32_0 : i32, i32
  }
  func.func @transform_3(%arg0: i32) -> (i32, i32) {
    %c0_i32 = arith.constant 0 : i32
    %c0_i32_0 = arith.constant 0 : i32
    %c0_i32_1 = arith.constant 0 : i32
    return %c0_i32, %c0_i32_0 : i32, i32
  }
  func.func @transform_4(%arg0: i32) -> (i32, i32) {
    %c0_i32 = arith.constant 0 : i32
    %c0_i32_0 = arith.constant 0 : i32
    %c0_i32_1 = arith.constant 0 : i32
    return %c0_i32, %c0_i32_0 : i32, i32
  }
  func.func @transform_5(%arg0: i32) -> (i32, i32) {
    %c0_i32 = arith.constant 0 : i32
    %c0_i32_0 = arith.constant 0 : i32
    %c0_i32_1 = arith.constant 0 : i32
    return %c0_i32, %c0_i32_0 : i32, i32
  }
  func.func @transform_6(%arg0: i32) -> (i32, i32) {
    %c0_i32 = arith.constant 0 : i32
    %c0_i32_0 = arith.constant 0 : i32
    %c0_i32_1 = arith.constant 0 : i32
    return %c0_i32, %c0_i32_0 : i32, i32
  }
  func.func @transform_7(%arg0: i32) -> (i32, i32) {
    %c0_i32 = arith.constant 0 : i32
    %c0_i32_0 = arith.constant 0 : i32
    return %arg0, %c0_i32 : i32, i32
  }
}

</mosaic_0001>

<bundles_post_ra>
// kernel: tpu_custom_call.1
= control target key start
LH: loop header
LB: loop body
LE: loop exit
PB: predicated region body
PF: predicated region fallthrough
CT: control target
= control target key end

     0   :  { %s833_s0 = inlined_call_operand.vmem [shape: f32[4,400], index: 0, kind: input, shape index: {}]   ;;  %s834_s1 = inlined_call_operand.vmem [shape: bf16[400,32], index: 1, kind: input, shape index: {}]   ;;  %s835_s2 = inlined_call_operand.vmem [shape: f32[1,32], index: 2, kind: input, shape index: {}]   ;;  %s836_s3 = inlined_call_operand.vmem [shape: bf16[32,32], index: 3, kind: input, shape index: {}]   ;;  %s837_s4 = inlined_call_operand.vmem [shape: f32[1,32], index: 4, kind: input, shape index: {}]   ;;  %s838_s5 = inlined_call_operand.vmem [shape: f32[32,1], index: 5, kind: input, shape index: {}]   ;;  %s839_s6 = inlined_call_operand.<no memory space> [shape: f32[1,1], index: 6, kind: input, shape index: {}]   ;;  %s840_s7 = inlined_call_operand.vmem [shape: f32[4,1], index: 7, kind: output, shape index: {}]  }
   0x1   :  { %v12_v0 = vstv %s839_s6 }
   0x2   :  { %13 = vst [vmem:[#allocation2] sm:$0x1] %v12_v0 }
   0x3   :  { %v627_v1 = vld [vmem:[%s834_s1 + $0x78] sm:$0xff]   ;;  %v664_v2 = vmov 0   ;;  %v630_v5 = vld [vmem:[%s834_s1 + $0x70] sm:$0xff]   ;;  %v633_v8 = vld [vmem:[%s834_s1 + $0x68] sm:$0xff]   ;;  %vm256_vm0 = vcmask 130048   ;;  %v665_v36 = vmov 0.0  }
   0x4   :  { %300 = vmatprep.subr.bf16.mxu1 %v664_v2  ;;  %v628_v3 = vld [vmem:[%s834_s1 + $0xb8] sm:$0xff]   ;;  %575 = vmatprep.subr.bf16.mxu0 %v627_v1  ;;  %v631_v6 = vld [vmem:[%s834_s1 + $0xb0] sm:$0xff]   ;;  %v634_v9 = vld [vmem:[%s834_s1 + $0xa8] sm:$0xff]   ;;  %vm666_vm1 = vmmov 0   ;;  %vm365_vm2 = vcmask 261120   ;;  %vm499_vm3 = vcmask 7168  }
   0x5   :  { %v629_v4 = vld [vmem:[%s834_s1 + $0x38] sm:$0xff]   ;;  %301 = vmatpush1.bf16.msra.mxu1 %v628_v3  ;;  %v632_v7 = vld [vmem:[%s834_s1 + $0x30] sm:$0xff]   ;;  %v635_v10 = vld [vmem:[%s834_s1 + $0x28] sm:$0xff]  }
   0x6   :  { %576 = vmatpush3.bf16.msra.mxu0 %v629_v4  ;;  %302 = vmatprep.subr.bf16.mxu1 %v664_v2  ;;  %v636_v11 = vld [vmem:[%s834_s1 + $0x60] sm:$0xff]   ;;  %v639_v14 = vld [vmem:[%s834_s1 + $0x58] sm:$0xff]   ;;  %v642_v17 = vld [vmem:[%s834_s1 + $0x50] sm:$0xff]  }
   0x7   :  { %577 = vmatprep.subr.bf16.mxu0 %v630_v5  ;;  %v637_v12 = vld [vmem:[%s834_s1 + $0xa0] sm:$0xff]   ;;  %v640_v15 = vld [vmem:[%s834_s1 + $0x98] sm:$0xff]   ;;  %v643_v18 = vld [vmem:[%s834_s1 + $0x90] sm:$0xff]  }
   0x8   :  { %v638_v13 = vld [vmem:[%s834_s1 + $0x20] sm:$0xff]   ;;  %v641_v16 = vld [vmem:[%s834_s1 + $0x18] sm:$0xff]   ;;  %v644_v19 = vld [vmem:[%s834_s1 + $0x10] sm:$0xff]  }
   0x9   :  { %303 = vmatpush1.bf16.msra.mxu1 %v631_v6  ;;  %v645_v20 = vld [vmem:[%s834_s1 + $0x48] sm:$0xff]   ;;  %v648_v23 = vld [vmem:[%s834_s1 + $0x40] sm:$0xff]   ;;  %v413_v38 = vld [vmem:[%s838_s5 + $0x18] sm:$0xff] }
   0xa   :  { %578 = vmatpush3.bf16.msra.mxu0 %v632_v7  ;;  %304 = vmatprep.subr.bf16.mxu1 %v664_v2  ;;  %v646_v21 = vld [vmem:[%s834_s1 + $0x88] sm:$0xff]   ;;  %v649_v24 = vld [vmem:[%s834_s1 + $0x80] sm:$0xff]   ;;  %v412_v39 = vld [vmem:[%s838_s5 + $0x10] sm:$0xff] }
   0xb   :  { %579 = vmatprep.subr.bf16.mxu0 %v633_v8  ;;  %v647_v22 = vld [vmem:[%s834_s1 + $0x8] sm:$0xff]   ;;  %v653_v25 = vld [vmem:[%s833_s0 + $0x4] ss:$16 sps:$4 sm:$0xff]   ;;  %v651_v27 = vld [vmem:[%s833_s0] ss:$16 sps:$4 sm:$0xff]  }
   0xc   :  { %v650_v26 = vld [vmem:[%s834_s1] sm:$0xff]   ;;  %v46_v28 = vpack.c.bf16 %v653_v25, %v653_v25  ;;  %v657_v29 = vld [vmem:[%s833_s0 + $0xc] ss:$16 sps:$4 sm:$0xff]   ;;  %v655_v31 = vld [vmem:[%s833_s0 + $0x8] ss:$16 sps:$4 sm:$0xff]   ;;  %v45_v32 = vpack.c.bf16 %v651_v27, %v651_v27 }
   0xd   :  { %305 = vmatpush1.bf16.msra.mxu1 %v634_v9  ;;  %v48_v30 = vpack.c.bf16 %v657_v29, %v657_v29  ;;  %v654_v33 = vld [vmem:[%s834_s1 + $0xc0] sm:$0xff]   ;;  %v47_v34 = vpack.c.bf16 %v655_v31, %v655_v31  ;;  %v658_v35 = vld [vmem:[%s836_s3 + $0x8] sm:$0xff]  }
   0xe   :  { %580 = vmatpush3.bf16.msra.mxu0 %v635_v10  ;;  %306 = vmatprep.subr.bf16.mxu1 %v664_v2  ;;  %v659_v37 = vld [vmem:[%s836_s3] sm:$0xff]   ;;  %v411_v54 = vld [vmem:[%s838_s5 + $0x8] sm:$0xff] }
   0xf   :  { %581 = vmatprep.subr.bf16.mxu0 %v636_v11  ;;  %292 = vmatprep.mubr.bf16.mxu0 %v46_v28  ;;  %v542_v42 = vld [vmem:[%s835_s2] ss:$0 sm:$0xff] }
  0x10   :  { %568 = vmatprep.mubr.msk.bf16.mxu1 %vm256_vm0, %v48_v30  ;;  %v410_v55 = vld [vmem:[%s838_s5] sm:$0xff] }
  0x11   :  { %307 = vmatpush1.bf16.msra.mxu1 %v637_v12  ;;  %v569_v56 = vld [vmem:[%s837_s4] ss:$0 sm:$0xff] }
  0x12   :  { %582 = vmatpush3.bf16.msra.mxu0 %v638_v13  ;;  %308 = vmatprep.subr.bf16.mxu1 %v664_v2  ;;  %v573_v63 = vld [vmem:[#allocation2] ss:$0 sm:$0xff] }
  0x13   :  { %583 = vmatprep.subr.bf16.mxu0 %v639_v14 }
  0x15   :  { %309 = vmatpush1.bf16.msra.mxu1 %v640_v15 }
  0x16   :  { %584 = vmatpush3.bf16.msra.mxu0 %v641_v16  ;;  %310 = vmatprep.subr.bf16.mxu1 %v664_v2 }
  0x17   :  { %585 = vmatprep.subr.bf16.mxu0 %v642_v17 }
  0x19   :  { %311 = vmatpush1.bf16.msra.mxu1 %v643_v18 }
  0x1a   :  { %586 = vmatpush3.bf16.msra.mxu0 %v644_v19  ;;  %312 = vmatprep.subr.bf16.mxu1 %v664_v2 }
  0x1b   :  { %587 = vmatprep.subr.bf16.mxu0 %v645_v20 }
  0x1d   :  { %313 = vmatpush1.bf16.msra.mxu1 %v646_v21 }
  0x1e   :  { %588 = vmatpush3.bf16.msra.mxu0 %v647_v22  ;;  %314 = vmatprep.subr.bf16.mxu1 %v664_v2 }
  0x1f   :  { %589 = vmatprep.subr.bf16.mxu0 %v648_v23 }
  0x21   :  { %315 = vmatpush1.bf16.msra.mxu1 %v649_v24 }
  0x22   :  { %590 = vmatpush3.bf16.msra.mxu0 %v650_v26  ;;  %330 = vmatprep.subr.bf16.mxu1 %v664_v2 }
  0x23   :  { %605 = vmatprep.subr.bf16.mxu0 %v665_v36 }
  0x25   :  { %293 = vmatmul.mubr.bf16.vlgmr.msra.gmra.mxu0 %v45_v32  ;;  %331 = vmatpush2.bf16.msra.mxu1 %v654_v33 }
  0x26   :  { %613 = vmatprep.subr.mxu1 %v665_v36  ;;  %606 = vmatpush3.bf16.msra.mxu0 %v658_v35 }
  0x27   :  { %607 = vmatprep.subr.bf16.mxu0 %v665_v36  ;;  %609 = vmatprep.mubr.msk.bf16.mxu0 %vm666_vm1, %v665_v36 }
  0x28   :  { %333 = vmatmul.mubr.bf16.vlgmr.msra.gmra.mxu1 %v47_v34 }
  0x29   :  { %621 = vmatprep.mubr.msk.f32.mxu1 %vm666_vm1, %v665_v36  ;;  %614 = vmatpush3.msra.mxu1 %v413_v38 }
  0x2a   :  { %608 = vmatpush3.bf16.msra.mxu0 %v659_v37  ;;  %615 = vmatprep.subr.mxu1 %v665_v36 }
  0x2b   :  { %616 = vmatpush3.msra.mxu1 %v412_v39 }
  0x2c   :  { %617 = vmatprep.subr.mxu1 %v665_v36 }
  0x2d   :  { %618 = vmatpush3.msra.mxu1 %v411_v54 }
  0x2e   :  { %619 = vmatprep.subr.mxu1 %v665_v36 }
  0x2f   :  { %620 = vmatpush3.msra.mxu1 %v410_v55 }
  0xe5   :  { %v591_v40 = vpop.f32.mrf.mxu0 }
  0xe7   :  { %v592_v41 = vpop.f32.mrf.mxu0 }
  0xe8   :  { %v593_v43 = vadd.f32 %v592_v41, %v591_v40  ;;  %v334_v44 = vpop.f32.mrf.mxu1 }
  0xe9   :  { %v594_v45 = vpop.f32.mrf.mxu0 }
  0xea   :  { %v295_v46 = vadd.f32 %v593_v43, %v542_v42  ;;  %v336_v47 = vpop.f32.mrf.mxu1 }
  0xeb   :  { %v595_v48 = vpop.f32.mrf.mxu0 }
  0xec   :  { %v335_v49 = vadd.f32 %v334_v44, %v295_v46  ;;  %v337_v50 = vpop.f32.mrf.mxu1 }
  0xee   :  { %v340_v51 = vmax.f32 %v335_v49, 0.0  ;;  %v338_v52 = vpop.f32.mrf.mxu1 }
  0xf0   :  { %v341_v53 = vpack.c.bf16 %v340_v51, %v340_v51 }
  0xf2   :  { %610 = vmatmul.mubr.msk.bf16.vlgmr.msra.gmra.mxu0 %vm365_vm2, %v341_v53 }
 0x1b2   :  { %v403_v57 = vpop.f32.mrf.mxu0 }
 0x1b3   :  { %v404_v58 = vadd.f32 %v569_v56, %v403_v57 }
 0x1b4   :  { %v611_v59 = vpop.f32.mrf.mxu0 }
 0x1b5   :  { %v409_v60 = vmax.f32 %v404_v58, 0.0 }
 0x1b6   :  { %v406_v61 = vpop.f32.mrf.mxu0 }
 0x1b7   :  { %622 = vmatmul.mubr.msk.f32.vlgmr.msra.gmra.mxu1 %vm365_vm2, %v409_v60 }
 0x1b8   :  { %v612_v62 = vpop.f32.mrf.mxu0 }
 0x277   :  { %v490_v0 = vpop.f32.mrf.mxu1 }
 0x278   :  { %v491_v1 = vadd.f32 %v573_v63, %v490_v0 }
 0x279   :  { %v623_v2 = vpop.f32.mrf.mxu1 }
 0x27a   :  { %v494_v3 = vsub.f32 0.0, %v491_v1 }
 0x27c   :  { %v495_v4 = vmul.f32 1.442695, %v494_v3 }
 0x27e   :  { %660 = vpow2.f32 %v495_v4 }
 0x28b   :  { %v661_v5 = vpop.eup %660 }
 0x28c   :  { %v497_v6 = vadd.f32 1.0, %v661_v5 }
 0x28e   :  { %662 = vrcp.f32 %v497_v6 }
 0x29b   :  { %v663_v7 = vpop.eup %662 }
 0x29c   :  { %500 = vst.msk [vmem:[#allocation3] sm:$0xff] %vm499_vm3, %v663_v7 }
 0x2a3   :  { %v519_v8 = vld [vmem:[#allocation3] sm:$0xf] }
 0x2a4   :  { %520 = vst [vmem:[%s840_s7] sm:$0xf] %v519_v8 }

</bundles_post_ra>
